<compile_context>
chip_gen: v6e
topology: v6e:2x2x1
jax: 0.10.0
libtpu: 0.0.40
codegen_flags: <defaults>
</compile_context>

<pallas_src>
import functools

import jax
import jax.numpy as jnp
from jax.experimental import pallas as pl
from jax.experimental.pallas import tpu as pltpu


def _round_up(x, m):
    return (x + m - 1) // m * m


# ---------------------------------------------------------------------------
# Kernel
# ---------------------------------------------------------------------------
def xe_nll_kernel(lane_ref, vbias_ref, h_ref, w_ref, tgt_ref, mask_ref, nll_ref,
                  m_scr, l_scr, t_scr, *, apply_vbias):
    """Fused vocab-projection + online log-softmax + masked NLL (per row).

    Grid = (n_m, n_v); V is the innermost (carried) reduction axis.
      lane_ref : (1, tv)  i32  global vocab ids of this V tile (hoisted iota)
      vbias_ref: (1, tv)  f32  0 for valid vocab columns, -1e30 for padding
      h_ref    : (tm, H)  bf16 hidden states for this M tile (resident over j)
      w_ref    : (H, tv)  bf16 vocab-projection slice for this V tile (streamed)
      tgt_ref  : (tm, 1)  i32  target token ids
      mask_ref : (tm, 1)  f32  token mask
      nll_ref  : (tm, 1)  f32  out: mask * (logsumexp - target_logit)
      m/l/t_scr: (tm,128) f32  lane-replicated running max / sum-exp / target logit
    """
    j = pl.program_id(1)
    nv = pl.num_programs(1)

    @pl.when(j == 0)
    def _():
        m_scr[...] = jnp.full_like(m_scr, -1e30)
        l_scr[...] = jnp.zeros_like(l_scr)
        t_scr[...] = jnp.zeros_like(t_scr)

    # MXU: bf16 x bf16 -> f32 accumulation.
    logits = jnp.dot(h_ref[...], w_ref[...], preferred_element_type=jnp.float32)
    if apply_vbias:
        # Additive bias row: padded vocab columns pushed to -1e30 (one VPU add
        # per element instead of compare+select on every tile).
        logits = logits + vbias_ref[...]

    # Fused target gather (the target column lives in exactly one V tile).
    hit = lane_ref[...] == tgt_ref[...]                                  # (tm, tv)
    t_hit = jnp.sum(jnp.where(hit, logits, 0.0), axis=-1, keepdims=True)  # (tm, 1)

    # Per-tile stats in (tm, 1) value-space ...
    row_max = jnp.max(logits, axis=-1, keepdims=True)                     # (tm, 1)
    p_sum = jnp.sum(jnp.exp(logits - row_max), axis=-1, keepdims=True)    # (tm, 1)

    # ... merged into lane-replicated (tm, 128) running stats (two-scale form:
    # exp(logit - m_new) = exp(logit - row_max) * exp(row_max - m_new)).
    m_prev = m_scr[...]
    m_new = jnp.maximum(m_prev, row_max)
    alpha = jnp.exp(m_prev - m_new)
    scale = jnp.exp(row_max - m_new)

    l_scr[...] = l_scr[...] * alpha + p_sum * scale
    t_scr[...] = t_scr[...] + t_hit
    m_scr[...] = m_new

    @pl.when(j == nv - 1)
    def _():
        lse = m_scr[...] + jnp.log(l_scr[...])            # (tm, 128)
        nll = (lse - t_scr[...]) * mask_ref[...]          # (tm, 128)
        nll_ref[...] = nll[:, :1]                         # single store per M tile


# ---------------------------------------------------------------------------
# Generation-aware tile selection
# ---------------------------------------------------------------------------
def _select_tiles(M, H, V, tm_req=None, tv_req=None):
    """Pick (tm, tv, vmem_limit_bytes) per TPU generation / VMEM capacity."""
    try:
        vmem_cap = int(pltpu.get_tpu_info().vmem_capacity_bytes)
    except Exception:
        vmem_cap = 64 << 20  # conservative fallback (v7x per-TC capacity)

    small_vmem = vmem_cap <= (64 << 20)          # v7x: 64 MiB per TC
    budget = (40 << 20) if small_vmem else (80 << 20)
    tm = tm_req if tm_req is not None else (1024 if small_vmem else 2048)
    tv = tv_req if tv_req is not None else 2048

    tm = min(_round_up(tm, 8), _round_up(M, 8))
    tv = min(_round_up(tv, 128), _round_up(V, 128))

    # Megacore: when M is large, keep >= 2 M tiles so the "parallel" axis can
    # still shard across both TensorCores (v7x) instead of idling one.
    if tm_req is None and M >= 1024 and _round_up(M, tm) // tm == 1:
        tm = max(512, _round_up(-(-M // 2), 8))

    # Prefer a tv that divides V exactly (makes the W pad a no-op) if the
    # divisor is not much smaller than the requested tile.
    if tv_req is None and V % tv != 0 and V % 128 == 0:
        for cand in range(tv, tv // 2 - 1, -128):
            if cand > 0 and V % cand == 0:
                tv = cand
                break

    def vmem_use(tm_, tv_):
        return (2 * tm_ * H * 2        # hidden tile, double-buffered bf16
                + 2 * H * tv_ * 2      # W tile, double-buffered bf16
                + 2 * tm_ * tv_ * 4    # f32 logits + elementwise temporaries
                + 3 * tm_ * 128 * 4    # lane-dense running-stat scratch
                + 4 * tv_ * 8)         # lane-id / bias rows (double-buffered)

    while vmem_use(tm, tv) > budget:
        if tv > 1024:
            tv = _round_up(tv // 2, 128)
        elif tm > 512:
            tm = _round_up(tm // 2, 8)
        elif tv > 256:
            tv = _round_up(tv // 2, 128)
        elif tm > 64:
            tm = _round_up(tm // 2, 8)
        else:
            break

    vmem_limit = max(32 << 20,
                     min(vmem_cap * 3 // 4, vmem_use(tm, tv) + (8 << 20)))
    return tm, tv, vmem_limit


# ---------------------------------------------------------------------------
# Host wrapper around pallas_call
# ---------------------------------------------------------------------------
def masked_xe_loss(hidden, w_out, targets, mask, *, tm=None, tv=None):
    """LanguageModelCriterion: -sum(logprobs[target]*mask)/sum(mask)."""
    M, H = hidden.shape
    V = w_out.shape[1]
    tm, tv, vmem_limit = _select_tiles(M, H, V, tm, tv)
    # NOTE: for very large H (>~2048) one would also tile the contraction axis;
    # not needed at the hidden sizes this decoder produces.

    m_pad = _round_up(M, tm)
    v_pad = _round_up(V, tv)
    n_m, n_v = m_pad // tm, v_pad // tv

    h = hidden.astype(jnp.bfloat16)
    if m_pad != M:
        h = jnp.pad(h, ((0, m_pad - M), (0, 0)))
    w = w_out if w_out.dtype == jnp.bfloat16 else w_out.astype(jnp.bfloat16)
    if v_pad != V:
        w = jnp.pad(w, ((0, 0), (0, v_pad - V)))

    tgt = targets.astype(jnp.int32)
    msk = mask.astype(jnp.float32)
    if m_pad != M:
        tgt = jnp.pad(tgt, (0, m_pad - M))
        msk = jnp.pad(msk, (0, m_pad - M))
    tgt = tgt.reshape(m_pad, 1)
    msk = msk.reshape(m_pad, 1)

    # Hoisted per-V-tile metadata rows (replace per-step iota / compare+select).
    lane_ids = jnp.arange(v_pad, dtype=jnp.int32).reshape(1, v_pad)
    apply_vbias = v_pad != V
    vbias = jnp.where(lane_ids < V, 0.0, -1e30).astype(jnp.float32)

    kernel = functools.partial(xe_nll_kernel, apply_vbias=apply_vbias)

    cost = pl.CostEstimate(
        flops=2 * m_pad * H * v_pad,
        transcendentals=m_pad * v_pad,
        bytes_accessed=(m_pad * H * 2          # hidden (bf16)
                        + n_m * H * v_pad * 2  # W re-streamed per M tile (bf16)
                        + n_m * v_pad * 8      # lane-id / bias rows
                        + 3 * m_pad * 4),      # tgt / mask / nll
    )

    nll = pl.pallas_call(
        kernel,
        out_shape=jax.ShapeDtypeStruct((m_pad, 1), jnp.float32),
        grid_spec=pltpu.PrefetchScalarGridSpec(
            num_scalar_prefetch=0,
            grid=(n_m, n_v),
            in_specs=[
                pl.BlockSpec((1, tv), lambda i, j: (0, j)),   # lane ids
                pl.BlockSpec((1, tv), lambda i, j: (0, j)),   # vocab-pad bias
                pl.BlockSpec((tm, H), lambda i, j: (i, 0)),   # hidden (resident over j)
                pl.BlockSpec((H, tv), lambda i, j: (0, j)),   # W tile (streamed)
                pl.BlockSpec((tm, 1), lambda i, j: (i, 0)),   # targets
                pl.BlockSpec((tm, 1), lambda i, j: (i, 0)),   # mask
            ],
            out_specs=pl.BlockSpec((tm, 1), lambda i, j: (i, 0)),
            scratch_shapes=[pltpu.VMEM((tm, 128), jnp.float32)] * 3,
        ),
        compiler_params=pltpu.CompilerParams(
            dimension_semantics=("parallel", "arbitrary"),
            vmem_limit_bytes=vmem_limit,
        ),
        cost_estimate=cost,
    )(lane_ids, vbias, h, w, tgt, msk)

    num = jnp.sum(nll[:M, 0])
    den = jnp.maximum(jnp.sum(mask.astype(jnp.float32)), 1.0)  # guard sum(mask)==0
    return num / den


# ---------------------------------------------------------------------------
# Module wrapper (XE path of LossWrapperM2)
# ---------------------------------------------------------------------------
class LossWrapperM2Pallas:
    """Synthetic captioning model + LanguageModelCriterion (XE path).

    Deterministically-initialized parameters stand in for `self.model`:
      - token embedding   E      : (V, H)
      - object projection W_obj  : (D_obj, H)
      - vocab projection  W_out  : (H, V)
    """

    def __init__(self, vocab_size, hidden, d_obj, key, *, tm=None, tv=None):
        k1, k2, k3 = jax.random.split(key, 3)
        self.V = vocab_size
        self.H = hidden
        self.tm = tm
        self.tv = tv
        self.E = jax.random.normal(k1, (vocab_size, hidden), jnp.float32) * 0.02
        self.W_obj = jax.random.normal(k2, (d_obj, hidden), jnp.float32) * 0.02
        self.W_out = jax.random.normal(k3, (hidden, vocab_size), jnp.float32) * 0.02
        # Hoisted out of the per-call path: W_out is the largest tensor, keep a
        # bf16 copy around so every forward avoids a full f32->bf16 HBM pass.
        self.W_out_bf16 = self.W_out.astype(jnp.bfloat16)

    def forward(self, obj_f, labels, masks, tags=None, gts=None, gt_indices=None,
                SCST_flag=False):
        out = {}
        if SCST_flag:
            # TODO(synk): SCST branches need model sampling + external CIDEr
            # scorers (get_scores / get_self_cider_scores); no Pallas equivalent.
            raise NotImplementedError("SCST path not supported in Pallas port")

        # --- glue (plain JAX): synthetic decoder producing hidden states ---
        B, Tp1 = labels.shape
        T = Tp1 - 1
        obj_pool = jnp.mean(obj_f, axis=1) @ self.W_obj          # (B, H)
        emb = self.E[labels[:, :-1]]                             # (B, T, H)
        hidden = jnp.tanh(emb + obj_pool[:, None, :])            # (B, T, H)
        hidden = hidden.reshape(B * T, self.H)

        targets = labels[:, 1:].reshape(B * T)
        mask = masks[:, 1:].reshape(B * T)

        # --- hot path in Pallas ---
        loss = masked_xe_loss(hidden, self.W_out_bf16, targets, mask,
                              tm=self.tm, tv=self.tv)
        out["loss"] = loss
        return out


def _reference_loss(model, obj_f, labels, masks):
    """Pure-JAX reference of the same forward (bf16 matmul inputs, f32 math)."""
    B, Tp1 = labels.shape
    T = Tp1 - 1
    obj_pool = jnp.mean(obj_f, axis=1) @ model.W_obj
    emb = model.E[labels[:, :-1]]
    hidden = jnp.tanh(emb + obj_pool[:, None, :]).reshape(B * T, model.H)
    logits = (hidden.astype(jnp.bfloat16).astype(jnp.float32)
              @ model.W_out.astype(jnp.bfloat16).astype(jnp.float32))
    logprobs = jax.nn.log_softmax(logits, axis=-1)
    tgt = labels[:, 1:].reshape(B * T)
    msk = masks[:, 1:].reshape(B * T)
    lp_tgt = jnp.take_along_axis(logprobs, tgt[:, None], axis=-1)[:, 0]
    return -jnp.sum(lp_tgt * msk) / jnp.maximum(jnp.sum(msk), 1.0)


if __name__ == "__main__":
    key = jax.random.PRNGKey(0)
    k_param, k_obj, k_lab, k_len = jax.random.split(key, 4)

    # Small shapes: batch=4, n_obj=4, d_obj=16, hidden=64, vocab=500 (not a
    # multiple of 128, exercising the vocab-pad bias path), seq=8 (+1 bos).
    # tm=16, tv=128 -> grid (2, 4): exercises the parallel M axis, the online
    # log-softmax reduction over V tiles, and the streamed lane-id gather.
    B, N_OBJ, D_OBJ, H, V, T = 4, 4, 16, 64, 500, 8

    obj_f = jax.random.normal(k_obj, (B, N_OBJ, D_OBJ), jnp.float32)
    labels = jax.random.randint(k_lab, (B, T + 1), 1, V, dtype=jnp.int32)
    # mask: first `length` (+bos) tokens valid per sequence
    lengths = jax.random.randint(k_len, (B,), 3, T + 1, dtype=jnp.int32)
    masks = (jnp.arange(T + 1)[None, :] < (lengths[:, None] + 1)).astype(jnp.float32)

    wrapper = LossWrapperM2Pallas(vocab_size=V, hidden=H, d_obj=D_OBJ,
                                  key=k_param, tm=16, tv=128)

    out = wrapper.forward(obj_f, labels, masks, SCST_flag=False)
    loss = jax.block_until_ready(out["loss"])

    ref = jax.block_until_ready(_reference_loss(wrapper, obj_f, labels, masks))
    assert jnp.allclose(loss, ref, rtol=2e-3, atol=1e-4), (loss, ref)

    print("KERNEL_OK")
</pallas_src>

<mosaic_0001>
module attributes {stable_mosaic.version = 11 : i64} {
  func.func @xe_nll_kernel(%arg0: i32, %arg1: i32, %arg2: memref<1x128xi32, #tpu.memory_space<vmem>>, %arg3: memref<1x128xf32, #tpu.memory_space<vmem>>, %arg4: memref<16x64xbf16, #tpu.memory_space<vmem>>, %arg5: memref<64x128xbf16, #tpu.memory_space<vmem>>, %arg6: memref<16x1xi32, #tpu.memory_space<vmem>>, %arg7: memref<16x1xf32, #tpu.memory_space<vmem>>, %arg8: memref<16x1xf32, #tpu.memory_space<vmem>>, %arg9: memref<16x128xf32, #tpu.memory_space<vmem>>, %arg10: memref<16x128xf32, #tpu.memory_space<vmem>>, %arg11: memref<16x128xf32, #tpu.memory_space<vmem>>) attributes {dimension_semantics = [#tpu.dimension_semantics<parallel>, #tpu.dimension_semantics<arbitrary>], iteration_bounds = array<i64: 2, 4>, scalar_prefetch = 0 : i64, scratch_operands = 3 : i64, tpu.core_type = #tpu.core_type<tc>, window_params = [{transform_indices = @transform_0, window_bounds = array<i64: 1, 128>}, {transform_indices = @transform_1, window_bounds = array<i64: 1, 128>}, {transform_indices = @transform_2, window_bounds = array<i64: 16, 64>}, {transform_indices = @transform_3, window_bounds = array<i64: 64, 128>}, {transform_indices = @transform_4, window_bounds = array<i64: 16, 1>}, {transform_indices = @transform_5, window_bounds = array<i64: 16, 1>}, {transform_indices = @transform_6, window_bounds = array<i64: 16, 1>}]} {
    %c0_i32 = arith.constant 0 : i32
    %0 = arith.cmpi eq, %arg1, %c0_i32 : i32
    %1 = arith.extui %0 : i1 to i32
    %c0_i32_0 = arith.constant 0 : i32
    %2 = arith.cmpi ne, %1, %c0_i32_0 : i32
    scf.if %2 {
      %cst_27 = arith.constant -1.000000e+30 : f32
      %47 = vector.broadcast %cst_27 : f32 to vector<16x128xf32>
      %c0_28 = arith.constant 0 : index
      %c0_29 = arith.constant 0 : index
      %48 = vector.load %arg9[%c0_28, %c0_29] : memref<16x128xf32, #tpu.memory_space<vmem>>, vector<16x128xf32>
      tpu.vector_store %arg9[%c0_28, %c0_29], %47 {strides = array<i32>} : memref<16x128xf32, #tpu.memory_space<vmem>>, vector<16x128xf32>,
      %cst_30 = arith.constant 0.000000e+00 : f32
      %49 = vector.broadcast %cst_30 : f32 to vector<16x128xf32>
      %c0_31 = arith.constant 0 : index
      %c0_32 = arith.constant 0 : index
      %50 = vector.load %arg10[%c0_31, %c0_32] : memref<16x128xf32, #tpu.memory_space<vmem>>, vector<16x128xf32>
      tpu.vector_store %arg10[%c0_31, %c0_32], %49 {strides = array<i32>} : memref<16x128xf32, #tpu.memory_space<vmem>>, vector<16x128xf32>,
      %cst_33 = arith.constant 0.000000e+00 : f32
      %51 = vector.broadcast %cst_33 : f32 to vector<16x128xf32>
      %c0_34 = arith.constant 0 : index
      %c0_35 = arith.constant 0 : index
      %52 = vector.load %arg11[%c0_34, %c0_35] : memref<16x128xf32, #tpu.memory_space<vmem>>, vector<16x128xf32>
      tpu.vector_store %arg11[%c0_34, %c0_35], %51 {strides = array<i32>} : memref<16x128xf32, #tpu.memory_space<vmem>>, vector<16x128xf32>,
    } else {
    }
    %c0 = arith.constant 0 : index
    %c0_1 = arith.constant 0 : index
    %3 = vector.load %arg4[%c0, %c0_1] : memref<16x64xbf16, #tpu.memory_space<vmem>>, vector<16x64xbf16>
    %c0_2 = arith.constant 0 : index
    %c0_3 = arith.constant 0 : index
    %4 = vector.load %arg5[%c0_2, %c0_3] : memref<64x128xbf16, #tpu.memory_space<vmem>>, vector<64x128xbf16>
    %cst = arith.constant dense<0.000000e+00> : vector<16x128xf32>
    %5 = tpu.matmul %3, %4, %cst {dimension_numbers = #tpu.dot_dimension_numbers<[1], [0], [0], [1], [0, 0, 1, 1], [], []>} : vector<16x64xbf16>, vector<64x128xbf16>, vector<16x128xf32> -> vector<16x128xf32>
    %c0_4 = arith.constant 0 : index
    %c0_5 = arith.constant 0 : index
    %6 = vector.load %arg3[%c0_4, %c0_5] : memref<1x128xf32, #tpu.memory_space<vmem>>, vector<1x128xf32>
    %7 = vector.broadcast %6 : vector<1x128xf32> to vector<16x128xf32>
    %8 = arith.addf %5, %7 : vector<16x128xf32>
    %c0_6 = arith.constant 0 : index
    %c0_7 = arith.constant 0 : index
    %9 = vector.load %arg2[%c0_6, %c0_7] : memref<1x128xi32, #tpu.memory_space<vmem>>, vector<1x128xi32>
    %c0_8 = arith.constant 0 : index
    %c0_9 = arith.constant 0 : index
    %10 = vector.load %arg6[%c0_8, %c0_9] : memref<16x1xi32, #tpu.memory_space<vmem>>, vector<16x1xi32>
    %11 = vector.broadcast %9 : vector<1x128xi32> to vector<16x128xi32>
    %12 = vector.broadcast %10 : vector<16x1xi32> to vector<16x128xi32>
    %13 = arith.cmpi eq, %11, %12 : vector<16x128xi32>
    %cst_10 = arith.constant 0.000000e+00 : f32
    %14 = vector.broadcast %cst_10 : f32 to vector<16x128xf32>
    %15 = arith.select %13, %8, %14 : vector<16x128xi1>, vector<16x128xf32>
    %cst_11 = arith.constant dense<0.000000e+00> : vector<16xf32>
    %16 = vector.multi_reduction <add>, %15, %cst_11 [1] : vector<16x128xf32> to vector<16xf32>
    %17 = vector.shape_cast %16 : vector<16xf32> to vector<16x1xf32>
    %cst_12 = arith.constant dense<0xFF800000> : vector<16xf32>
    %18 = vector.multi_reduction <maximumf>, %8, %cst_12 [1] : vector<16x128xf32> to vector<16xf32>
    %19 = vector.shape_cast %18 : vector<16xf32> to vector<16x1xf32>
    %20 = vector.broadcast %19 : vector<16x1xf32> to vector<16x128xf32>
    %21 = arith.subf %8, %20 : vector<16x128xf32>
    %22 = math.exp %21 : vector<16x128xf32>
    %cst_13 = arith.constant dense<0.000000e+00> : vector<16xf32>
    %23 = vector.multi_reduction <add>, %22, %cst_13 [1] : vector<16x128xf32> to vector<16xf32>
    %24 = vector.shape_cast %23 : vector<16xf32> to vector<16x1xf32>
    %c0_14 = arith.constant 0 : index
    %c0_15 = arith.constant 0 : index
    %25 = vector.load %arg9[%c0_14, %c0_15] : memref<16x128xf32, #tpu.memory_space<vmem>>, vector<16x128xf32>
    %26 = vector.broadcast %19 : vector<16x1xf32> to vector<16x128xf32>
    %27 = arith.maximumf %25, %26 : vector<16x128xf32>
    %28 = arith.subf %25, %27 : vector<16x128xf32>
    %29 = math.exp %28 : vector<16x128xf32>
    %30 = vector.broadcast %19 : vector<16x1xf32> to vector<16x128xf32>
    %31 = arith.subf %30, %27 : vector<16x128xf32>
    %32 = math.exp %31 : vector<16x128xf32>
    %c0_16 = arith.constant 0 : index
    %c0_17 = arith.constant 0 : index
    %33 = vector.load %arg10[%c0_16, %c0_17] : memref<16x128xf32, #tpu.memory_space<vmem>>, vector<16x128xf32>
    %34 = arith.mulf %33, %29 : vector<16x128xf32>
    %35 = vector.broadcast %24 : vector<16x1xf32> to vector<16x128xf32>
    %36 = arith.mulf %35, %32 : vector<16x128xf32>
    %37 = arith.addf %34, %36 : vector<16x128xf32>
    %c0_18 = arith.constant 0 : index
    %c0_19 = arith.constant 0 : index
    %38 = vector.load %arg10[%c0_18, %c0_19] : memref<16x128xf32, #tpu.memory_space<vmem>>, vector<16x128xf32>
    tpu.vector_store %arg10[%c0_18, %c0_19], %37 {strides = array<i32>} : memref<16x128xf32, #tpu.memory_space<vmem>>, vector<16x128xf32>,
    %c0_20 = arith.constant 0 : index
    %c0_21 = arith.constant 0 : index
    %39 = vector.load %arg11[%c0_20, %c0_21] : memref<16x128xf32, #tpu.memory_space<vmem>>, vector<16x128xf32>
    %40 = vector.broadcast %17 : vector<16x1xf32> to vector<16x128xf32>
    %41 = arith.addf %39, %40 : vector<16x128xf32>
    %c0_22 = arith.constant 0 : index
    %c0_23 = arith.constant 0 : index
    %42 = vector.load %arg11[%c0_22, %c0_23] : memref<16x128xf32, #tpu.memory_space<vmem>>, vector<16x128xf32>
    tpu.vector_store %arg11[%c0_22, %c0_23], %41 {strides = array<i32>} : memref<16x128xf32, #tpu.memory_space<vmem>>, vector<16x128xf32>,
    %c0_24 = arith.constant 0 : index
    %c0_25 = arith.constant 0 : index
    %43 = vector.load %arg9[%c0_24, %c0_25] : memref<16x128xf32, #tpu.memory_space<vmem>>, vector<16x128xf32>
    tpu.vector_store %arg9[%c0_24, %c0_25], %27 {strides = array<i32>} : memref<16x128xf32, #tpu.memory_space<vmem>>, vector<16x128xf32>,
    %c3_i32 = arith.constant 3 : i32
    %44 = arith.cmpi eq, %arg1, %c3_i32 : i32
    %45 = arith.extui %44 : i1 to i32
    %c0_i32_26 = arith.constant 0 : i32
    %46 = arith.cmpi ne, %45, %c0_i32_26 : i32
    scf.if %46 {
      %c0_27 = arith.constant 0 : index
      %c0_28 = arith.constant 0 : index
      %47 = vector.load %arg9[%c0_27, %c0_28] : memref<16x128xf32, #tpu.memory_space<vmem>>, vector<16x128xf32>
      %c0_29 = arith.constant 0 : index
      %c0_30 = arith.constant 0 : index
      %48 = vector.load %arg10[%c0_29, %c0_30] : memref<16x128xf32, #tpu.memory_space<vmem>>, vector<16x128xf32>
      %49 = math.log %48 : vector<16x128xf32>
      %50 = arith.addf %47, %49 : vector<16x128xf32>
      %c0_31 = arith.constant 0 : index
      %c0_32 = arith.constant 0 : index
      %51 = vector.load %arg11[%c0_31, %c0_32] : memref<16x128xf32, #tpu.memory_space<vmem>>, vector<16x128xf32>
      %52 = arith.subf %50, %51 : vector<16x128xf32>
      %c0_33 = arith.constant 0 : index
      %c0_34 = arith.constant 0 : index
      %53 = vector.load %arg7[%c0_33, %c0_34] : memref<16x1xf32, #tpu.memory_space<vmem>>, vector<16x1xf32>
      %54 = vector.broadcast %53 : vector<16x1xf32> to vector<16x128xf32>
      %55 = arith.mulf %52, %54 : vector<16x128xf32>
      %56 = vector.extract_strided_slice %55 {offsets = [0, 0], sizes = [16, 1], strides = [1, 1]} : vector<16x128xf32> to vector<16x1xf32>
      %c0_35 = arith.constant 0 : index
      %c0_36 = arith.constant 0 : index
      %57 = vector.load %arg8[%c0_35, %c0_36] : memref<16x1xf32, #tpu.memory_space<vmem>>, vector<16x1xf32>
      tpu.vector_store %arg8[%c0_35, %c0_36], %56 {strides = array<i32>} : memref<16x1xf32, #tpu.memory_space<vmem>>, vector<16x1xf32>,
    } else {
    }
    return
  }
  func.func @transform_0(%arg0: i32, %arg1: i32) -> (i32, i32) {
    %c0_i32 = arith.constant 0 : i32
    %c0_i32_0 = arith.constant 0 : i32
    return %c0_i32, %arg1 : i32, i32
  }
  func.func @transform_1(%arg0: i32, %arg1: i32) -> (i32, i32) {
    %c0_i32 = arith.constant 0 : i32
    %c0_i32_0 = arith.constant 0 : i32
    return %c0_i32, %arg1 : i32, i32
  }
  func.func @transform_2(%arg0: i32, %arg1: i32) -> (i32, i32) {
    %c0_i32 = arith.constant 0 : i32
    %c0_i32_0 = arith.constant 0 : i32
    return %arg0, %c0_i32 : i32, i32
  }
  func.func @transform_3(%arg0: i32, %arg1: i32) -> (i32, i32) {
    %c0_i32 = arith.constant 0 : i32
    %c0_i32_0 = arith.constant 0 : i32
    return %c0_i32, %arg1 : i32, i32
  }
  func.func @transform_4(%arg0: i32, %arg1: i32) -> (i32, i32) {
    %c0_i32 = arith.constant 0 : i32
    %c0_i32_0 = arith.constant 0 : i32
    return %arg0, %c0_i32 : i32, i32
  }
  func.func @transform_5(%arg0: i32, %arg1: i32) -> (i32, i32) {
    %c0_i32 = arith.constant 0 : i32
    %c0_i32_0 = arith.constant 0 : i32
    return %arg0, %c0_i32 : i32, i32
  }
  func.func @transform_6(%arg0: i32, %arg1: i32) -> (i32, i32) {
    %c0_i32 = arith.constant 0 : i32
    %c0_i32_0 = arith.constant 0 : i32
    return %arg0, %c0_i32 : i32, i32
  }
}

</mosaic_0001>

<bundles_post_ra>
// kernel: tpu_custom_call.1
= control target key start
LH: loop header
LB: loop body
LE: loop exit
PB: predicated region body
PF: predicated region fallthrough
CT: control target
= control target key end

     0   :  { %s1174_s0 = inlined_call_operand.vmem [shape: s32[1,512], index: 0, kind: input, shape index: {}]   ;;  %s1175_s1 = inlined_call_operand.vmem [shape: f32[1,512], index: 1, kind: input, shape index: {}]   ;;  %s1176_s2 = inlined_call_operand.vmem [shape: bf16[32,64], index: 2, kind: input, shape index: {}]   ;;  %s1177_s3 = inlined_call_operand.hbm [shape: bf16[64,512], index: 3, kind: input, shape index: {}]   ;;  %s1178_s4 = inlined_call_operand.vmem [shape: s32[32,1], index: 4, kind: input, shape index: {}]   ;;  %s1179_s5 = inlined_call_operand.vmem [shape: f32[32,1], index: 5, kind: input, shape index: {}]   ;;  %s1180_s6 = inlined_call_operand.vmem [shape: f32[32,1], index: 6, kind: output, shape index: {}]  }
   0x1   :  { %1183 = sst [smem:[#allocation11_spill]] %s1177_s3 }
   0x2   :  { %11 = vsyncpa [#allocation6], 0 }
   0x3   :  { %13 = vsyncpa [#allocation6 + $0x1], 0  ;;  %s1007_s21 = smov 0   ;;  %s1009_s22 = smov 0  }
   0x4   :  { %s1011_s23 = smov 0   ;;  %s1013_s24 = smov 0  }
   0x5   :  { %s1015_s25 = smov 0   ;;  %s1017_s26 = smov 0  }
   0x6   :  { %s1019_s27 = smov 0   ;;  %s1021_s28 = smov 0  }
   0x7 LB: > { %1184 = sst [smem:[#allocation8_spill]] %s956_s27  ;;  %s717_s29 = sadd.s32 4294967295, %s960_s28   ;;  %s960_s28 = sphi %s1021_s28, %s19_s28   ;;  %s956_s27 = sphi %s1019_s27, %s1194_s27   ;;  %s952_s26 = sphi %s1017_s26, %s1199_s26   ;;  %s948_s25 = sphi %s1015_s25, %s1192_s25   ;;  %s944_s24 = sphi %s1013_s24, %s1198_s24   ;;  %s940_s23 = sphi %s1011_s23, %s1197_s23   ;;  %s936_s22 = sphi %s1009_s22, %s1196_s22   ;;  %s932_s21 = sphi %s1007_s21, %s1195_s21  }
   0x8   : > { %s28_s30 = sadd.s32 1, %s952_s26  ;;  %s31_s7 = sadd.s32 1, %s956_s27 }
   0x9   : > { %p29_p0 = scmp.ge.s32.totalorder %s28_s30, 4  ;;  %s116_s8 = sadd.s32 1, %s940_s23 }
   0xa   : > { %p123_p1 = scmp.ne.s32.totalorder %s940_s23, %s936_s22  ;;  %p124_p2 = scmp.eq.s32.totalorder %s960_s28, 0 }
   0xb   : > { %s1201_s30 = smov (%p29_p0, %s28_s30), 0  ;;  %s1203_s7 = smov (!%p29_p0, %s31_s7), %s956_s27 }
   0xc   : > { %1185 = sst [smem:[#allocation9_spill]] %s1201_s30  ;;  %s113_s9 = ssub.s32 %s952_s26, %s1201_s30 }
   0xd   : > { %p33_p3 = scmp.ge.s32.totalorder %s1203_s7, 2  ;;  %p114_p4 = scmp.eq.s32.totalorder %s113_s9, 0 }
   0xe   : > { %p1057_p5 = por %p124_p2, %p123_p1  ;;  %p129_p6 = scmp.ne.s32.totalorder %s936_s22, %s932_s21 }
   0xf   : > { %s1205_s7 = smov (%p33_p3, %s1203_s7), 0  ;;  %p130_p7 = scmp.eq.s32.totalorder %s717_s29, 0 }
  0x10   : > { %1187 = sst [smem:[#allocation10_spill]] %s1205_s7  ;;  %p768_p8 = scmp.lt.s32.totalorder %s960_s28, 8 }
  0x11   : > { %s1065_s11 = scalar_select %p114_p4, %s940_s23, %s116_s8  }
  0x12   : > { %s252_s12 = sand.u32 1, %s940_s23   ;;  %p1069_p9 = por %p130_p7, %p129_p6 }
  0x13   : > { %s721_s14 = sshll.u32 %s252_s12, 5  ;;  %s722_s15 = sshll.u32 %s952_s26, 6 }
  0x14   : > { %s1189_s3 = sld [smem:[#allocation11_spill]]  ;;  %s256_s19 = scalar_lea.vmem [#allocation5], %s721_s14 }
  0x15   : > { %s262_s20 = sshll.u32 %s256_s19, 4  ;;  %p1079_p10 = pnand %p768_p8, %p1057_p5  ;;  %s263_s20 = int_to_ptr.vmem [resolvable:$true] %s262_s20 }
  0x16   : > { %p723_p11 = scmp.ge.s32.totalorder %s960_s28, 1  ;;  %s253_s29 = scalar_lea.sflag [#allocation6], %s252_s12 }
  0x17   : > { %p868_p12 = pneg %p1079_p10  ;;  %s879_s8 = scalar_lea.vmem %s263_s20, 512 }
  0x18   : > { %p880_p13 = scmp.ne.s32.totalorder %s263_s20, %s879_s8  ;;  %s962_s9 = smov [#allocation5]  }
  0x19   : > { %s884_s16 = sshll.u32 %s962_s9, 4  ;;  %s885_s16 = int_to_ptr.vmem [resolvable:$false] %s884_s16 }
  0x1a   : > { %s261_s18 = scalar_lea.hbm %s1189_s3, %s722_s15  ;;  %p882_p0 = pnand %p880_p13, %p868_p12 }
  0x1b   : > { %s886_s14 = scalar_lea.vmem %s885_s16, 1024  ;;  %p887_p2 = scmp.lt.s32.totalorder %s263_s20, %s885_s16 }
  0x1c   : > { %p883_p1 = pneg %p882_p0  ;;  %p888_p3 = scmp.lt.s32.totalorder %s886_s14, %s879_s8 }
  0x1e   : > { %p889_p4 = por %p888_p3, %p887_p2 }
  0x20   : > { %p890_p5 = pnand %p889_p4, %p883_p1 }
  0x22   : > { %893 = shalt.err (!%p890_p5)
}
  0x23   : > { %s963_s10 = smov 256   ;;  %s964_s12 = smov 64  }
  0x24   : > { %s965_s15 = smov 4   ;;  %p288_p6 = scmp.lt.s32.totalorder %s960_s28, 9 }
  0x25   : > { %767 = dma.hbm_to_vmem [thread:$0]  (!%p1079_p10), %s261_s18, 512, %s263_s20, %s253_s29, %s963_s10, %s964_s12, %s965_s15  }
  0x26   : > { %p289_p7 = pnand %p723_p11, %p288_p6 }
  0x27   : > { %s294_s17 = sand.u32 (!%p289_p7), 1, %s936_s22  }
  0x28   : > { %292 = sbr.rel (%p289_p7) target bundleno = 708 (0x2c4), region = 44  ;;  %s724_s19 = sshll.u32 (!%p289_p7), %s294_s17, 5 }
  0x29   : > { %s295_s8 = scalar_lea.sflag (!%p289_p7), [#allocation6], %s294_s17  ;;  %s1092_s9 = scalar_lea.vmem (!%p289_p7), [#allocation5], %s724_s19 }
  0x2d   : > { %927 = dma.done.wait (%p1069_p9), %s295_s8, 512  }
  0x2e   : > { %929 = vsyncadd (%p1069_p9), %s295_s8, 4294966784  ;;  %p348_p8 = scmp.lt.s32.totalorder %s944_s24, 3  ;;  %s725_s18 = sshll.u32 %s948_s25, 1 }
  0x2f   : > { %p355_p10 = scmp.lt.s32.totalorder %s725_s18, 3  ;;  %p733_p9 = scmp.ne.s32.totalorder %s944_s24, 0 }
  0x30   : > { %s1101_s20 = scalar_select %p348_p8, %s944_s24, 3 }
  0x31   : > { %s1207_s18 = smov (!%p355_p10, %s725_s18), 3  ;;  %382 = sbr.rel (%p733_p9) target bundleno = 58 (0x3a), region = 52 }
  0x32   : > { %s353_s13 = scalar_lea.vmem %s1175_s1, %s1101_s20  ;;  %s726_s12 = sshll.u32 %s1207_s18, 2 }
  0x33   : > { %s728_s15 = sshll.u32 %s1207_s18, 3  ;;  %s1114_s25 = scalar_lea.vmem %s1176_s2, %s726_s12 }
  0x34   : > { %s364_s7 = scalar_lea.vmem %s1178_s4, %s728_s15  ;;  %s1122_s21 = scalar_lea.vmem %s1179_s5, %s728_s15 }
  0x35   : > { %s1127_s14 = scalar_lea.vmem %s1180_s6, %s728_s15 }
  0x36   : > { %v966_v0 = vmov -1e+30   ;;  %v967_v1 = vmov 0.0  }
  0x37   : > { %383 = vst [vmem:[#allocation2] sm:$0xff] %v966_v0  ;;  %384 = vst [vmem:[#allocation2 + $0x8] sm:$0xff] %v966_v0 }
  0x38   : > { %385 = vst [vmem:[#allocation3 + $0x8] sm:$0xff] %v967_v1  ;;  %386 = vst [vmem:[#allocation3] sm:$0xff] %v967_v1 }
  0x39   : > { %387 = vst [vmem:[#allocation4 + $0x8] sm:$0xff] %v967_v1  ;;  %388 = vst [vmem:[#allocation4] sm:$0xff] %v967_v1 }
  0x3a PF: > { %v844_v2 = vld [vmem:[%s1092_s9 + $0x18] sm:$0xff]   ;;  %v968_v3 = vmov 0.0   ;;  %v845_v4 = vld [vmem:[%s1092_s9 + $0x10] sm:$0xff]   ;;  %vm969_vm0 = vmmov 0   ;;  %v970_v5 = vmov 0   ;;  %v846_v7 = vld [vmem:[%s1092_s9 + $0x8] sm:$0xff]  }
  0x3b   : > { %750 = vmatprep.subr.bf16.mxu0 %v968_v3  ;;  %758 = vmatprep.mubr.msk.bf16.mxu0 %vm969_vm0, %v968_v3  ;;  %v481_v6 = vld [vmem:[%s364_s7] sm:$0xff]  ;;  %v482_v8 = vld [vmem:[%s364_s7 + $0x8] sm:$0xff]  ;;  %v847_v9 = vld [vmem:[%s1092_s9] sm:$0xff]   ;;  %vm435_vm1 = vcmask 523264   ;;  %s1191_s9 = scalar_lea.vmem %s1174_s0, %s1101_s20  ;;  %p742_p11 = scmp.ne.s32.totalorder %s944_s24, 3 }
  0x3c   : > { %751 = vmatpush3.bf16.msra.mxu0 %v844_v2  ;;  %842 = vset.pattern.permute.xlu1 %v970_v5  ;;  %v848_v10 = vld [vmem:[%s1114_s25] sm:$0xff]  }
  0x3d   : > { %752 = vmatprep.subr.bf16.mxu0 %v968_v3  ;;  %843 = vset.pattern.permute.xlu0 %v970_v5  ;;  %v734_v11 = vld [vmem:[%s353_s13] ss:$0 sm:$0xff] }
  0x3e   : > { %488 = vperm.xlu1 %842, %v481_v6   ;;  %v515_v18 = vld [vmem:[#allocation2] sm:$0xff]  ;;  %v516_v25 = vld [vmem:[#allocation2 + $0x8] sm:$0xff] }
  0x3f   : > { %v741_v32 = vld [vmem:[%s1191_s9] ss:$0 sm:$0xff]  ;;  %v531_v44 = vld [vmem:[#allocation3 + $0x8] sm:$0xff]  ;;  %v532_v50 = vld [vmem:[#allocation3] sm:$0xff] }
  0x40   : > { %753 = vmatpush3.bf16.msra.mxu0 %v845_v4  ;;  %v541_v51 = vld [vmem:[#allocation4 + $0x8] sm:$0xff]  ;;  %v542_v59 = vld [vmem:[#allocation4] sm:$0xff] }
  0x41   : > { %754 = vmatprep.subr.bf16.mxu0 %v968_v3 }
  0x42   : > { %491 = vperm.xlu1 %842, %v482_v8  }
  0x44   : > { %755 = vmatpush3.bf16.msra.mxu0 %v846_v7 }
  0x45   : > { %756 = vmatprep.subr.bf16.mxu0 %v968_v3 }
  0x48   : > { %757 = vmatpush3.bf16.msra.mxu0 %v847_v9 }
  0x4b   : > { %759 = vmatmul.mubr.msk.bf16.vlgmr.msra.gmra.mxu0 %vm435_vm1, %v848_v10 }
  0xb9   : > { %v489_v31 = vpop.permute.xlu1 %488 }
  0xba   : > { %vm493_vm2 = vcmp.eq.s32.totalorder %v741_v32, %v489_v31 }
  0xbd   : > { %v492_v34 = vpop.permute.xlu1 %491 }
  0xbe   : > { %vm494_vm3 = vcmp.eq.s32.totalorder %v741_v32, %v492_v34 }
 0x10b   : > { %v473_v12 = vpop.f32.mrf.mxu0 }
 0x10c   : > { %v474_v13 = vadd.f32 %v734_v11, %v473_v12 }
 0x10d   : > { %v760_v14 = vpop.f32.mrf.mxu0 }
 0x10e   : > { %501 = vmax.xlane.f32.xlu0 %v474_v13  ;;  %v495_v36 = vsel %vm493_vm2, %v474_v13, 0.0 }
 0x10f   : > { %v476_v15 = vpop.f32.mrf.mxu0 }
 0x110   : > { %v477_v16 = vadd.f32 %v734_v11, %v476_v15 }
 0x111   : > { %v761_v17 = vpop.f32.mrf.mxu0 }
 0x112   : > { %503 = vmax.xlane.f32.xlu0 %v477_v16  ;;  %v496_v37 = vsel %vm494_vm3, %v477_v16, 0.0 }
 0x197   : > { %v502_v19 = vpop.xlane.xlu0 %501 }
 0x198   : > { %v505_v20 = vsub.f32 %v474_v13, %v502_v19  ;;  %v517_v21 = vmax.f32 %v515_v18, %v502_v19 }
 0x19a   : > { %v507_v22 = vmul.f32 1.442695, %v505_v20  ;;  %v519_v23 = vsub.f32 %v515_v18, %v517_v21  ;;  %v525_v24 = vsub.f32 %v502_v19, %v517_v21  ;;  %547 = vst [vmem:[#allocation2] sm:$0xff] %v517_v21 }
 0x19b   : > { %v504_v26 = vpop.xlane.xlu0 %503 }
 0x19c   : > { %849 = vpow2.f32 %v507_v22  ;;  %v506_v27 = vsub.f32 %v477_v16, %v504_v26  ;;  %v518_v28 = vmax.f32 %v516_v25, %v504_v26  ;;  %v521_v38 = vmul.f32 1.442695, %v519_v23 }
 0x19d   : > { %v527_v39 = vmul.f32 1.442695, %v525_v24 }
 0x19e   : > { %v509_v29 = vmul.f32 1.442695, %v506_v27  ;;  %v520_v30 = vsub.f32 %v516_v25, %v518_v28  ;;  %548 = vst [vmem:[#allocation2 + $0x8] sm:$0xff] %v518_v28  ;;  %v526_v40 = vsub.f32 %v504_v26, %v518_v28 }
 0x1a0   : > { %851 = vpow2.f32 %v509_v29  ;;  %v523_v41 = vmul.f32 1.442695, %v520_v30  ;;  %v529_v42 = vmul.f32 1.442695, %v526_v40 }
 0x1a1   : > { %853 = vpow2.f32 %v521_v38 }
 0x1a2   : > { %855 = vpow2.f32 %v527_v39 }
 0x1a3   : > { %857 = vpow2.f32 %v523_v41 }
 0x1a4   : > { %859 = vpow2.f32 %v529_v42 }
 0x1a9   : > { %v850_v33 = vpop.eup %849 }
 0x1aa   : > { %511 = vadd.xlane.f32.xlu0 %v850_v33 }
 0x1ad   : > { %v852_v35 = vpop.eup %851 }
 0x1ae   : > { %497 = vadd.xlane.f32.xlu0 %v495_v36  ;;  %513 = vadd.xlane.f32.xlu1 %v852_v35  ;;  %v854_v43 = vpop.eup %853 }
 0x1af   : > { %v856_v45 = vpop.eup %855  ;;  %v533_v47 = vmul.f32 %v854_v43, %v531_v44 }
 0x1b0   : > { %v858_v49 = vpop.eup %857 }
 0x1b1   : > { %v860_v53 = vpop.eup %859  ;;  %v534_v56 = vmul.f32 %v858_v49, %v532_v50 }
 0x1b2   : > { %499 = vadd.xlane.f32.xlu0 %v496_v37 }
 0x233   : > { %v512_v46 = vpop.xlane.xlu0 %511 }
 0x234   : > { %v535_v48 = vmul.f32 %v856_v45, %v512_v46 }
 0x236   : > { %v537_v52 = vadd.f32 %v535_v48, %v533_v47 }
 0x237   : > { %v514_v54 = vpop.xlane.xlu1 %513  ;;  %v498_v55 = vpop.xlane.xlu0 %497 }
 0x238   : > { %539 = vst [vmem:[#allocation3 + $0x8] sm:$0xff] %v537_v52  ;;  %v536_v57 = vmul.f32 %v860_v53, %v514_v54  ;;  %v543_v58 = vadd.f32 %v541_v51, %v498_v55 }
 0x23a   : > { %v538_v60 = vadd.f32 %v536_v57, %v534_v56  ;;  %545 = vst [vmem:[#allocation4 + $0x8] sm:$0xff] %v543_v58  ;;  %552 = sbr.rel (%p742_p11) target bundleno = 708 (0x2c4), region = 56 }
 0x23b   : > { %v500_v61 = vpop.xlane.xlu0 %499 }
 0x23c   : > { %540 = vst [vmem:[#allocation3] sm:$0xff] %v538_v60  ;;  %v544_v62 = vadd.f32 %v542_v59, %v500_v61 }
 0x23e   : > { %546 = vst [vmem:[#allocation4] sm:$0xff] %v544_v62 }
 0x23f   : > { %v567_v63 = vld [vmem:[%s1122_s21] sm:$0xff]  ;;  %v971_v0 = vmov 0   ;;  %v568_v1 = vld [vmem:[%s1122_s21 + $0x8] sm:$0xff]  ;;  %v555_v2 = vld [vmem:[#allocation3 + $0x8] sm:$0xff]  ;;  %vm581_vm4 = vcmask 7168  }
 0x240   : > { %861 = vset.pattern.permute.xlu0 %v971_v0  ;;  %862 = vlog2.f32 %v555_v2  ;;  %v553_v7 = vld [vmem:[#allocation2] sm:$0xff]  ;;  %v554_v11 = vld [vmem:[#allocation2 + $0x8] sm:$0xff] }
 0x241   : > { %571 = vperm.xlu0 %861, %v567_v63   ;;  %v563_v10 = vld [vmem:[#allocation4 + $0x8] sm:$0xff] }
 0x243   : > { %v556_v3 = vld [vmem:[#allocation3] sm:$0xff] }
 0x244   : > { %864 = vlog2.f32 %v556_v3 }
 0x245   : > { %576 = vperm.xlu0 %861, %v568_v1   ;;  %v564_v14 = vld [vmem:[#allocation4] sm:$0xff] }
 0x24d   : > { %v863_v4 = vpop.eup %862 }
 0x24e   : > { %v558_v5 = vmul.f32 0.6931472, %v863_v4 }
 0x250   : > { %v561_v8 = vadd.f32 %v558_v5, %v553_v7 }
 0x251   : > { %v865_v6 = vpop.eup %864 }
 0x252   : > { %v560_v9 = vmul.f32 0.6931472, %v865_v6  ;;  %v565_v12 = vsub.f32 %v561_v8, %v563_v10 }
 0x254   : > { %v562_v13 = vadd.f32 %v560_v9, %v554_v11 }
 0x256   : > { %v566_v17 = vsub.f32 %v562_v13, %v564_v14 }
 0x2bc   : > { %v572_v15 = vpop.permute.xlu0 %571 }
 0x2bd   : > { %v579_v16 = vmul.f32 %v572_v15, %v565_v12 }
 0x2bf   : > { %582 = vst.msk [vmem:[%s1127_s14] sm:$0xff] %vm581_vm4, %v579_v16 }
 0x2c0   : > { %v577_v18 = vpop.permute.xlu0 %576 }
 0x2c1   : > { %v580_v19 = vmul.f32 %v577_v18, %v566_v17 }
 0x2c3   : > { %583 = vst.msk [vmem:[%s1127_s14 + $0x8] sm:$0xff] %vm581_vm4, %v580_v19 }
 0x2c4 PF: > { %s19_s28 = sadd.s32 1, %s960_s28   ;;  %s1192_s25 = sld [smem:[#allocation8_spill]] }
 0x2c5   : > { %p16_p12 = scmp.ge.s32.totalorder %s19_s28, 10   ;;  %s1193_s18 = sld [smem:[#allocation9_spill]] }
 0x2c6   : > { %s1194_s27 = sld [smem:[#allocation10_spill]]  ;;  %s1195_s21 = smov %s936_s22 }
 0x2c7   : > { %s1196_s22 = smov %s940_s23  ;;  %s1197_s23 = smov %s1065_s11 }
 0x2c8   : > { %s1198_s24 = smov %s952_s26  ;;  %18 = sbr.rel (!%p16_p12) target bundleno = 7 (0x7), region = 107 }
 0x2cb   : > { %s1199_s26 = smov %s1193_s18 }
 0x2cd   :  { %606 = vsyncpa [#allocation6], 1 }
 0x2ce   :  { %608 = vsyncpa [#allocation6 + $0x1], 1 }

</bundles_post_ra>
